<compile_context>
chip_gen: v7x
topology: tpu7x:2x2x1
jax: 0.10.0
libtpu: 0.0.40
codegen_flags: <defaults>
</compile_context>

<pallas_src>
import functools

import jax
import jax.numpy as jnp
from jax.experimental import pallas as pl
from jax.experimental.pallas import tpu as pltpu

LANE = 128
SUBLANE = 8
MAX_BLOCK_ROWS = 2048      # ~1 MiB of f32 per input per grid step
_PAD_LOGIT = -1e4          # sigmoid(_PAD_LOGIT) == 0 in f32 -> padded BCE term == 0


def _round_up(a, b):
    return ((a + b - 1) // b) * b


def _bce_kernel(x_ref, t_ref, out_ref, acc_ref, *, n_elements):
    i = pl.program_id(0)

    @pl.when(i == 0)
    def _():
        acc_ref[...] = jnp.zeros_like(acc_ref)

    x = x_ref[...].astype(jnp.float32)
    t = t_ref[...].astype(jnp.float32)

    p = jax.nn.sigmoid(x)
    # PyTorch's binary_cross_entropy clamps the log terms at -100.
    log_p = jnp.maximum(jnp.log(p), jnp.float32(-100.0))
    log_1mp = jnp.maximum(jnp.log(1.0 - p), jnp.float32(-100.0))
    loss = -(t * log_p + (1.0 - t) * log_1mp)

    # Reduce the (block_rows, 128) block to (8, 128) with VPU tile adds and accumulate.
    block_rows = loss.shape[0]
    acc_ref[...] += loss.reshape(block_rows // SUBLANE, SUBLANE, LANE).sum(axis=0)

    @pl.when(i == pl.num_programs(0) - 1)
    def _():
        out_ref[0, 0] = jnp.sum(acc_ref[...]) / jnp.float32(n_elements)


def bce_loss(inp, target):
    """Equivalent of BCELoss.forward(input, target): mean BCE after sigmoid."""
    n = inp.size
    x = jnp.ravel(inp)
    t = jnp.ravel(target)

    # Choose a block size up to MAX_BLOCK_ROWS that keeps padding waste tiny
    # (at most num_blocks * 8 rows).
    rows = pl.cdiv(n, LANE)
    num_blocks = pl.cdiv(rows, MAX_BLOCK_ROWS)
    block_rows = _round_up(pl.cdiv(rows, num_blocks), SUBLANE)
    rows_pad = num_blocks * block_rows
    pad = rows_pad * LANE - n

    # Pad logits with a large negative constant (-> zero loss contribution) and targets
    # with 0, then view as a lane-dense 2-D slab.  When n is block-aligned the pads are
    # zero-width no-ops.
    x = jnp.pad(x, (0, pad), constant_values=_PAD_LOGIT).reshape(rows_pad, LANE)
    t = jnp.pad(t, (0, pad)).reshape(rows_pad, LANE)

    out = pl.pallas_call(
        functools.partial(_bce_kernel, n_elements=n),
        out_shape=jax.ShapeDtypeStruct((1, 1), jnp.float32),
        grid_spec=pltpu.PrefetchScalarGridSpec(
            num_scalar_prefetch=0,
            grid=(num_blocks,),
            in_specs=[
                pl.BlockSpec((block_rows, LANE), lambda i: (i, 0)),
                pl.BlockSpec((block_rows, LANE), lambda i: (i, 0)),
            ],
            out_specs=pl.BlockSpec(
                (1, 1), lambda i: (0, 0), memory_space=pltpu.SMEM
            ),
            scratch_shapes=[pltpu.VMEM((SUBLANE, LANE), jnp.float32)],
        ),
        compiler_params=pltpu.CompilerParams(
            dimension_semantics=("arbitrary",)
        ),
    )(x, t)

    return out[0, 0]


def _bce_ref(inp, target):
    p = jax.nn.sigmoid(jnp.ravel(inp).astype(jnp.float32))
    t = jnp.ravel(target).astype(jnp.float32)
    log_p = jnp.maximum(jnp.log(p), -100.0)
    log_1mp = jnp.maximum(jnp.log(1.0 - p), -100.0)
    return jnp.mean(-(t * log_p + (1.0 - t) * log_1mp))


if __name__ == "__main__":
    key = jax.random.PRNGKey(0)
    k1, k2 = jax.random.split(key)

    # NCHW-like input (B, C, H, W) = (2, 4, 16, 16); target in {0, 1}.
    x = jax.random.normal(k1, (2, 4, 16, 16), dtype=jnp.float32)
    tgt = (jax.random.uniform(k2, (2, 4, 16, 16)) > 0.5).astype(jnp.float32)

    loss = bce_loss(x, tgt)
    jax.block_until_ready(loss)
    ref = _bce_ref(x, tgt)
    assert jnp.allclose(loss, ref, rtol=1e-5, atol=1e-5), (loss, ref)

    # Ragged (non-multiple-of-1024) shape to exercise the padded tail path.
    k3, k4 = jax.random.split(k2)
    x2 = jax.random.normal(k3, (3, 5, 7, 11), dtype=jnp.float32)
    t2 = (jax.random.uniform(k4, (3, 5, 7, 11)) > 0.5).astype(jnp.float32)
    loss2 = bce_loss(x2, t2)
    jax.block_until_ready(loss2)
    ref2 = _bce_ref(x2, t2)
    assert jnp.allclose(loss2, ref2, rtol=1e-5, atol=1e-5), (loss2, ref2)

    print("KERNEL_OK")
</pallas_src>

<mosaic_0001>
module attributes {stable_mosaic.version = 11 : i64} {
  func.func @_bce_kernel(%arg0: i32, %arg1: memref<16x128xf32, #tpu.memory_space<vmem>>, %arg2: memref<16x128xf32, #tpu.memory_space<vmem>>, %arg3: memref<1x1xf32, #tpu.memory_space<smem>>, %arg4: memref<8x128xf32, #tpu.memory_space<vmem>>) attributes {dimension_semantics = [#tpu.dimension_semantics<arbitrary>], iteration_bounds = array<i64: 1>, scalar_prefetch = 0 : i64, scratch_operands = 1 : i64, tpu.core_type = #tpu.core_type<tc>, window_params = [{transform_indices = @transform_0, window_bounds = array<i64: 16, 128>}, {transform_indices = @transform_1, window_bounds = array<i64: 16, 128>}, {transform_indices = @transform_2, window_bounds = array<i64: 1, 1>}]} {
    %c0_i32 = arith.constant 0 : i32
    %0 = arith.cmpi eq, %arg0, %c0_i32 : i32
    %1 = arith.extui %0 : i1 to i32
    %c0_i32_0 = arith.constant 0 : i32
    %2 = arith.cmpi ne, %1, %c0_i32_0 : i32
    scf.if %2 {
      %cst_16 = arith.constant 0.000000e+00 : f32
      %33 = vector.broadcast %cst_16 : f32 to vector<8x128xf32>
      %c0_17 = arith.constant 0 : index
      %c0_18 = arith.constant 0 : index
      %34 = vector.load %arg4[%c0_17, %c0_18] : memref<8x128xf32, #tpu.memory_space<vmem>>, vector<8x128xf32>
      tpu.vector_store %arg4[%c0_17, %c0_18], %33 {strides = array<i32>} : memref<8x128xf32, #tpu.memory_space<vmem>>, vector<8x128xf32>,
    } else {
    }
    %c0 = arith.constant 0 : index
    %c0_1 = arith.constant 0 : index
    %3 = vector.load %arg1[%c0, %c0_1] : memref<16x128xf32, #tpu.memory_space<vmem>>, vector<16x128xf32>
    %c0_2 = arith.constant 0 : index
    %c0_3 = arith.constant 0 : index
    %4 = vector.load %arg2[%c0_2, %c0_3] : memref<16x128xf32, #tpu.memory_space<vmem>>, vector<16x128xf32>
    %5 = arith.negf %3 : vector<16x128xf32>
    %6 = math.exp %5 : vector<16x128xf32>
    %cst = arith.constant 1.000000e+00 : f32
    %7 = vector.broadcast %cst : f32 to vector<16x128xf32>
    %8 = arith.addf %7, %6 : vector<16x128xf32>
    %9 = arith.divf %7, %8 : vector<16x128xf32>
    %10 = math.log %9 : vector<16x128xf32>
    %cst_4 = arith.constant -1.000000e+02 : f32
    %11 = vector.broadcast %cst_4 : f32 to vector<16x128xf32>
    %12 = arith.maximumf %10, %11 : vector<16x128xf32>
    %cst_5 = arith.constant 1.000000e+00 : f32
    %13 = vector.broadcast %cst_5 : f32 to vector<16x128xf32>
    %14 = arith.subf %13, %9 : vector<16x128xf32>
    %15 = math.log %14 : vector<16x128xf32>
    %cst_6 = arith.constant -1.000000e+02 : f32
    %16 = vector.broadcast %cst_6 : f32 to vector<16x128xf32>
    %17 = arith.maximumf %15, %16 : vector<16x128xf32>
    %18 = arith.mulf %4, %12 : vector<16x128xf32>
    %cst_7 = arith.constant 1.000000e+00 : f32
    %19 = vector.broadcast %cst_7 : f32 to vector<16x128xf32>
    %20 = arith.subf %19, %4 : vector<16x128xf32>
    %21 = arith.mulf %20, %17 : vector<16x128xf32>
    %22 = arith.addf %18, %21 : vector<16x128xf32>
    %cst_8 = arith.constant 0.000000e+00 : f32
    %23 = vector.broadcast %cst_8 : f32 to vector<16x128xf32>
    %24 = arith.subf %23, %22 : vector<16x128xf32>
    %c0_9 = arith.constant 0 : index
    %c0_10 = arith.constant 0 : index
    %25 = vector.load %arg4[%c0_9, %c0_10] : memref<8x128xf32, #tpu.memory_space<vmem>>, vector<8x128xf32>
    %26 = vector.shape_cast %24 : vector<16x128xf32> to vector<2x8x128xf32>
    %cst_11 = arith.constant dense<0.000000e+00> : vector<8x128xf32>
    %27 = vector.multi_reduction <add>, %26, %cst_11 [0] : vector<2x8x128xf32> to vector<8x128xf32>
    %28 = arith.addf %25, %27 : vector<8x128xf32>
    %c0_12 = arith.constant 0 : index
    %c0_13 = arith.constant 0 : index
    %29 = vector.load %arg4[%c0_12, %c0_13] : memref<8x128xf32, #tpu.memory_space<vmem>>, vector<8x128xf32>
    tpu.vector_store %arg4[%c0_12, %c0_13], %28 {strides = array<i32>} : memref<8x128xf32, #tpu.memory_space<vmem>>, vector<8x128xf32>,
    %c0_i32_14 = arith.constant 0 : i32
    %30 = arith.cmpi eq, %arg0, %c0_i32_14 : i32
    %31 = arith.extui %30 : i1 to i32
    %c0_i32_15 = arith.constant 0 : i32
    %32 = arith.cmpi ne, %31, %c0_i32_15 : i32
    scf.if %32 {
      %c0_16 = arith.constant 0 : index
      %c0_17 = arith.constant 0 : index
      %33 = vector.load %arg4[%c0_16, %c0_17] : memref<8x128xf32, #tpu.memory_space<vmem>>, vector<8x128xf32>
      %34 = vector.shape_cast %33 : vector<8x128xf32> to vector<1x8x128xf32>
      %cst_18 = arith.constant dense<0.000000e+00> : vector<1xf32>
      %35 = vector.multi_reduction <add>, %34, %cst_18 [1, 2] : vector<1x8x128xf32> to vector<1xf32>
      %36 = vector.shape_cast %35 : vector<1xf32> to vector<1x1x1xf32>
      %37 = vector.extract %36[0, 0, 0] : f32 from vector<1x1x1xf32>
      %cst_19 = arith.constant 2.048000e+03 : f32
      %38 = arith.divf %37, %cst_19 : f32
      %c0_20 = arith.constant 0 : index
      %c0_21 = arith.constant 0 : index
      %39 = memref.load %arg3[%c0_20, %c0_21] : memref<1x1xf32, #tpu.memory_space<smem>>
      memref.store %38, %arg3[%c0_20, %c0_21] : memref<1x1xf32, #tpu.memory_space<smem>>
    } else {
    }
    return
  }
  func.func @transform_0(%arg0: i32) -> (i32, i32) {
    %c0_i32 = arith.constant 0 : i32
    %c0_i32_0 = arith.constant 0 : i32
    return %arg0, %c0_i32 : i32, i32
  }
  func.func @transform_1(%arg0: i32) -> (i32, i32) {
    %c0_i32 = arith.constant 0 : i32
    %c0_i32_0 = arith.constant 0 : i32
    return %arg0, %c0_i32 : i32, i32
  }
  func.func @transform_2(%arg0: i32) -> (i32, i32) {
    %c0_i32 = arith.constant 0 : i32
    %c0_i32_0 = arith.constant 0 : i32
    %c0_i32_1 = arith.constant 0 : i32
    return %c0_i32, %c0_i32_0 : i32, i32
  }
}

</mosaic_0001>

<bundles_post_ra>
// kernel: tpu_custom_call.1
= control target key start
LH: loop header
LB: loop body
LE: loop exit
PB: predicated region body
PF: predicated region fallthrough
CT: control target
= control target key end

     0   :  { %7 = vsyncpa [#allocation4], 0  ;;  %s263_s0 = inlined_call_operand.hbm [shape: f32[16,128], index: 0, kind: input, shape index: {}]   ;;  %s264_s1 = inlined_call_operand.hbm [shape: f32[16,128], index: 1, kind: input, shape index: {}]   ;;  %s265_s2 = inlined_call_operand.hbm [shape: f32[1,1], index: 2, kind: output, shape index: {}]  }
   0x1   :  { %8 = vsyncpa [#allocation7], 0 }
   0x2   :  { %9 = vsyncpa [#allocation5], 0  ;;  %s207_s9 = smov [#allocation3]   ;;  %s147_s13 = scalar_lea.hbm %s263_s0, 256 }
   0x3   :  { %s15_s10 = sshll.u32 %s207_s9, 4  ;;  %p148_p0 = scmp.ne.s32.totalorder %s263_s0, %s147_s13  ;;  %s16_s10 = int_to_ptr.vmem [resolvable:$true] %s15_s10 }
   0x4   :  { %p151_p1 = scmp.lt.u32.totalorder %s147_s13, %s263_s0 }
   0x6   :  { %p153_p2 = pnand %p151_p1, %p148_p0 }
   0x8   :  { %156 = shalt.err (!%p153_p2)
}
   0x9   :  { %s157_s18 = scalar_lea.vmem %s16_s10, 256  ;;  %p162_p4 = scmp.lt.s32.totalorder %s16_s10, %s16_s10 }
   0xa   :  { %p158_p3 = scmp.ne.s32.totalorder %s16_s10, %s157_s18  ;;  %p163_p5 = scmp.lt.s32.totalorder %s157_s18, %s157_s18 }
   0xc   :  { %p164_p6 = por %p163_p5, %p162_p4 }
   0xe   :  { %p165_p7 = pnand %p164_p6, %p158_p3 }
  0x10   :  { %168 = shalt.err (!%p165_p7)
}
  0x11   :  { %s208_s19 = smov 128   ;;  %s209_s20 = smov 8  }
  0x12   :  { %21 = dma.hbm_to_vmem [thread:$0]  %s263_s0, 256, %s16_s10, [#allocation4], %s208_s19, %s208_s19, %s209_s20  }
  0x13   :  { %s210_s23 = smov [#allocation6]   ;;  %s169_s27 = scalar_lea.hbm %s264_s1, 256 }
  0x14   :  { %s27_s24 = sshll.u32 %s210_s23, 4  ;;  %p170_p8 = scmp.ne.s32.totalorder %s264_s1, %s169_s27  ;;  %s28_s24 = int_to_ptr.vmem [resolvable:$true] %s27_s24 }
  0x15   :  { %p173_p9 = scmp.lt.u32.totalorder %s169_s27, %s264_s1 }
  0x17   :  { %p175_p10 = pnand %p173_p9, %p170_p8 }
  0x19   :  { %178 = shalt.err (!%p175_p10)
}
  0x1a   :  { %s179_s4 = scalar_lea.vmem %s28_s24, 256  ;;  %p184_p12 = scmp.lt.s32.totalorder %s28_s24, %s28_s24 }
  0x1b   :  { %p180_p11 = scmp.ne.s32.totalorder %s28_s24, %s179_s4  ;;  %p185_p13 = scmp.lt.s32.totalorder %s179_s4, %s179_s4 }
  0x1d   :  { %p186_p0 = por %p185_p13, %p184_p12 }
  0x1f   :  { %p187_p1 = pnand %p186_p0, %p180_p11 }
  0x21   :  { %190 = shalt.err (!%p187_p1)
}
  0x22   :  { %33 = dma.hbm_to_vmem [thread:$0]  %s264_s1, 256, %s28_s24, [#allocation7], %s208_s19, %s208_s19, %s209_s20  }
  0x23   :  { %201 = dma.done.wait [#allocation4], 256  }
  0x24   :  { %202 = vsyncadd [#allocation4], 4294967040 }
  0x25   :  { %203 = dma.done.wait [#allocation7], 256  }
  0x26   :  { %204 = vsyncadd [#allocation7], 4294967040  ;;  %v45_v0 = vld [vmem:[#allocation3] sm:$0xff]  ;;  %v46_v1 = vld [vmem:[#allocation3 + $0x8] sm:$0xff]  ;;  %s191_s9 = scalar_lea.hbm %s265_s2, 16 }
  0x27   :  { %v122_v2 = vmul.f32 -1.442695, %v45_v0  ;;  %v123_v3 = vmul.f32 -1.442695, %v46_v1  ;;  %v47_v13 = vld [vmem:[#allocation6] sm:$0xff]  ;;  %v48_v15 = vld [vmem:[#allocation6 + $0x8] sm:$0xff]  ;;  %p192_p2 = scmp.ne.s32.totalorder %s265_s2, %s191_s9  ;;  %p195_p3 = scmp.lt.u32.totalorder %s191_s9, %s265_s2 }
  0x28   :  { %v77_v22 = vsub.f32 1.0, %v47_v13  ;;  %v78_v25 = vsub.f32 1.0, %v48_v15 }
  0x29   :  { %131 = vpow2.f32 %v122_v2  ;;  %p197_p4 = pnand %p195_p3, %p192_p2 }
  0x2a   :  { %133 = vpow2.f32 %v123_v3 }
  0x33   :  { %v132_v4 = vpop.eup %131 }
  0x34   :  { %v134_v5 = vpop.eup %133  ;;  %v55_v6 = vadd.f32 1.0, %v132_v4 }
  0x35   :  { %v56_v7 = vadd.f32 1.0, %v134_v5 }
  0x36   :  { %135 = vrcp.f32 %v55_v6 }
  0x37   :  { %137 = vrcp.f32 %v56_v7 }
  0x40   :  { %v136_v8 = vpop.eup %135 }
  0x41   :  { %v138_v9 = vpop.eup %137  ;;  %139 = vlog2.f32 %v136_v8  ;;  %v67_v10 = vsub.f32 1.0, %v136_v8 }
  0x42   :  { %141 = vlog2.f32 %v138_v9  ;;  %v68_v11 = vsub.f32 1.0, %v138_v9 }
  0x43   :  { %143 = vlog2.f32 %v67_v10 }
  0x44   :  { %145 = vlog2.f32 %v68_v11 }
  0x4b   :  { %v140_v12 = vpop.eup %139 }
  0x4c   :  { %v142_v14 = vpop.eup %141  ;;  %v62_v16 = vmul.f32 0.6931472, %v140_v12 }
  0x4d   :  { %v144_v17 = vpop.eup %143  ;;  %v64_v18 = vmul.f32 0.6931472, %v142_v14 }
  0x4e   :  { %v146_v19 = vpop.eup %145  ;;  %v65_v20 = vmax.f32 %v62_v16, -100.0  ;;  %v70_v21 = vmul.f32 0.6931472, %v144_v17 }
  0x4f   :  { %v66_v23 = vmax.f32 %v64_v18, -100.0  ;;  %v72_v24 = vmul.f32 0.6931472, %v146_v19 }
  0x50   :  { %v73_v26 = vmax.f32 %v70_v21, -100.0  ;;  %v75_v27 = vmul.f32 %v65_v20, %v47_v13 }
  0x51   :  { %v74_v28 = vmax.f32 %v72_v24, -100.0  ;;  %v76_v29 = vmul.f32 %v66_v23, %v48_v15 }
  0x52   :  { %v79_v30 = vmul.f32 %v77_v22, %v73_v26 }
  0x53   :  { %v80_v31 = vmul.f32 %v78_v25, %v74_v28 }
  0x54   :  { %v81_v32 = vadd.f32 %v79_v30, %v75_v27 }
  0x55   :  { %v82_v33 = vadd.f32 %v80_v31, %v76_v29 }
  0x56   :  { %v83_v34 = vsub.f32 0.0, %v81_v32 }
  0x57   :  { %v84_v35 = vsub.f32 0.0, %v82_v33 }
  0x59   :  { %v86_v36 = vadd.f32 %v84_v35, %v83_v34 }
  0x5b   :  { %93 = vadd.xlane.f32.xlu0 %v86_v36 }
  0xe8   :  { %v94_v37 = vpop.xlane.xlu0 %93 }
  0xe9   :  { %v95_v38 = vrot.slane %v94_v37, 4 }
  0xeb   :  { %v96_v39 = vadd.f32 %v95_v38, %v94_v37 }
  0xed   :  { %v97_v40 = vrot.slane %v96_v39, 2 }
  0xef   :  { %v98_v41 = vadd.f32 %v97_v40, %v96_v39 }
  0xf1   :  { %v99_v42 = vrot.slane %v98_v41, 1 }
  0xf3   :  { %v100_v43 = vadd.f32 %v99_v42, %v98_v41 }
  0xf5   :  { %124 = vpush %v100_v43 }
 0x126   :  { %s125_s1 = spop %124 }
 0x127   :  { %s104_s6 = smul.f32 0.00048828125, %s125_s1 }
 0x129   :  { %106 = sst [smem:[#allocation8]] %s104_s6 }
 0x12a   :  { %200 = shalt.err (!%p197_p4)
}
 0x12b   :  { %s211_s14 = smov [#allocation8]  }
 0x12c   :  { %114 = dma.smem_to_hbm %s211_s14, 16, %s265_s2, [#allocation5]  }
 0x12d   :  { %205 = dma.done.wait [#allocation5], 16  }
 0x12e   :  { %206 = vsyncadd [#allocation5], 4294967280 }
 0x12f   :  { %118 = sfence }
 0x130   :  { %119 = vsyncpa [#allocation4], 1 }
 0x131   :  { %120 = vsyncpa [#allocation7], 1 }
 0x132   :  { %121 = vsyncpa [#allocation5], 1 }

</bundles_post_ra>
